<compile_context>
chip_gen: v6e
topology: v6e:2x2x1
jax: 0.10.0
libtpu: 0.0.40
codegen_flags: <defaults>
</compile_context>

<pallas_src>
import math
import jax
import jax.numpy as jnp
from jax.experimental import pallas as pl
from jax.experimental.pallas import tpu as pltpu


# ----------------------------------------------------------------------------
# Kernel body: one MXU matmul + one VPU add per row tile.  Pure 2-D, no
# reshape, lane-dense output when g*E % 128 == 0.
# ----------------------------------------------------------------------------
def _embed_kernel(x_ref, w_ref, pe_ref, o_ref):
    # x_ref : (tr, g*Din)  grouped input rows for this tile
    # w_ref : (g*Din, g*E) block-diagonal feature-embedding weight
    # pe_ref: (tr, g*E)    positional encoding (bias folded in), pre-tiled
    # o_ref : (tr, g*E)    output tile
    y = jnp.dot(x_ref[...], w_ref[...], preferred_element_type=jnp.float32)
    o_ref[...] = (y + pe_ref[...]).astype(o_ref.dtype)


# ----------------------------------------------------------------------------
# Tiling heuristics
# ----------------------------------------------------------------------------
def _round_up(x, m):
    return (x + m - 1) // m * m


def _pick_row_group(S, E):
    """Smallest divisor g of S s.t. g*E % 128 == 0 (lane-dense output rows)."""
    fallback = 1
    for g in range(1, S + 1):
        if S % g:
            continue
        if (g * E) % 128 == 0:
            return g                      # smallest => minimal MXU K overhead
        if g * E <= 256:
            fallback = g                  # partial lane-density improvement
    return fallback


def _vmem_params():
    """(tile budget, vmem_limit_bytes) chosen per chip generation."""
    try:
        cap = int(pltpu.get_tpu_info().vmem_capacity_bytes)
    except Exception:
        cap = 64 * 1024 * 1024            # be conservative if query fails
    if cap >= 100 * 1024 * 1024:          # v5e / v6e: 128 MiB physical VMEM
        return 64 * 1024 * 1024, 100 * 1024 * 1024
    # v7x: 64 MiB physical / 32 MiB scoped default
    return 20 * 1024 * 1024, 32 * 1024 * 1024


def _pick_rows_per_tile(R, Sg, Dg, Eg, vmem_budget, min_steps):
    """Rows (grouped) per grid step.

    Constraints: tile rows are a multiple of Sg (whole sequences, so the
    pre-tiled PE lines up) and of 8 (sublane-aligned second-minor blocks),
    OR the tile equals the whole array.  VMEM accounting uses lane/sublane
    PADDED sizes: minor dims round up to 128, second-minor to 8.
    """
    unit = Sg * 8 // math.gcd(Sg, 8)      # smallest legal multi-step tile
    if R <= unit:
        return R                          # single full-array tile (always legal)

    in_row = _round_up(Dg, 128) * 4       # padded bytes per x row (f32)
    out_row = _round_up(Eg, 128) * 4      # padded bytes per out row (f32)
    # x (2 bufs) + out (2 bufs) + pre-tiled pe (2 bufs)
    per_row = 2 * in_row + 2 * out_row + 2 * out_row
    w_bytes = 2 * _round_up(Dg, 8) * _round_up(Eg, 128) * 4

    avail = max(vmem_budget - w_bytes, per_row)
    cap_vmem = max(unit, (avail // per_row) // unit * unit)
    if min_steps <= 1:
        cap_steps = R
    else:
        cap_steps = max(unit, (R // min_steps) // unit * unit)
    return min(cap_vmem, cap_steps)


# ----------------------------------------------------------------------------
# Wrapper
# ----------------------------------------------------------------------------
def time_series_embedding(x, weight, pe_plus_bias, out_dtype=None):
    """x: (B, S, Din) f32; weight: (Din, E) (= torch nn.Linear weight TRANSPOSED);
    pe_plus_bias: (max_len, E) = sinusoidal PE + Linear bias (folded once)."""
    B, S, Din = x.shape
    assert weight.ndim == 2 and weight.shape[0] == Din, (
        "weight must be (input_dim, embed_dim); transpose torch's (E, Din) layout")
    E = weight.shape[1]
    assert pe_plus_bias.shape[0] >= S, "seq_len exceeds positional-encoding max_len"
    out_dtype = x.dtype if out_dtype is None else out_dtype

    # Row grouping: g positions per row -> lane-dense output rows of width g*E.
    g = _pick_row_group(S, E)
    Sg, Dg, Eg = S // g, g * Din, g * E
    R = B * Sg                                    # total grouped rows

    vmem_budget, vmem_limit = _vmem_params()
    min_steps = 4 if B >= 8 else (2 if B >= 2 else 1)
    tr = _pick_rows_per_tile(R, Sg, Dg, Eg, vmem_budget, min_steps)
    R_pad = _round_up(R, tr)
    grid = (R_pad // tr,)

    # Grouped operands (all free / tiny wrapper-side ops).
    x_g = x.reshape(R, Dg)                        # contiguous reshape
    if R_pad > R:
        x_g = jnp.pad(x_g, ((0, R_pad - R), (0, 0)))
    w_bd = jnp.kron(jnp.eye(g, dtype=weight.dtype), weight)     # (Dg, Eg) block-diag
    pe_g = pe_plus_bias[:S, :].reshape(Sg, Eg)                  # (Sg, Eg)
    pe_tile = jnp.tile(pe_g, (tr // Sg, 1))                     # (tr, Eg), one tile's worth

    out = pl.pallas_call(
        _embed_kernel,
        out_shape=jax.ShapeDtypeStruct((R_pad, Eg), out_dtype),
        grid_spec=pltpu.PrefetchScalarGridSpec(
            num_scalar_prefetch=0,
            grid=grid,
            in_specs=[
                pl.BlockSpec((tr, Dg), lambda i: (i, 0)),   # grouped input rows
                pl.BlockSpec((Dg, Eg), lambda i: (0, 0)),   # grid-invariant weight
                pl.BlockSpec((tr, Eg), lambda i: (0, 0)),   # grid-invariant pe tile
            ],
            out_specs=pl.BlockSpec((tr, Eg), lambda i: (i, 0)),
        ),
        compiler_params=pltpu.CompilerParams(
            dimension_semantics=("parallel",),              # megacore sharding on v7x
            vmem_limit_bytes=vmem_limit,                    # chip-aware scoped limit
        ),
        cost_estimate=pl.CostEstimate(
            flops=2 * R_pad * Dg * Eg,
            transcendentals=0,
            bytes_accessed=(R_pad * (Dg + Eg) + Dg * Eg + tr * Eg) * 4,
        ),
    )(x_g, w_bd, pe_tile)

    # Drop padded rows and restore (B, S, E) — free contiguous reshape.
    return out[:R].reshape(B, S, E)


def make_positional_encoding(embed_dim, max_len):
    """Same formula as the PyTorch PositionalEncoding buffer (shape [max_len, E])."""
    position = jnp.arange(0, max_len, dtype=jnp.float32)[:, None]          # (L, 1)
    div_term = jnp.exp(jnp.arange(0, embed_dim, 2, dtype=jnp.float32)
                       * (-math.log(10000.0) / embed_dim))                 # (E/2,)
    angles = position * div_term                                            # (L, E/2)
    pe = jnp.zeros((max_len, embed_dim), dtype=jnp.float32)
    pe = pe.at[:, 0::2].set(jnp.sin(angles))
    pe = pe.at[:, 1::2].set(jnp.cos(angles))
    return pe


if __name__ == "__main__":
    # Small shapes consistent with the module's forward:
    # x: [batch_size=2, seq_len=8, input_dim=4], embed_dim=32, max_len=1000
    batch, seq_len, input_dim, embed_dim, max_len = 2, 8, 4, 32, 1000

    key = jax.random.PRNGKey(0)
    kx, kw, kb = jax.random.split(key, 3)

    x = jax.random.normal(kx, (batch, seq_len, input_dim), dtype=jnp.float32)
    # nn.Linear(input_dim, embed_dim): torch weight is (E, Din) — we store the
    # transposed (Din, E) layout expected by the wrapper.
    weight = jax.random.normal(kw, (input_dim, embed_dim), dtype=jnp.float32) * 0.1
    bias = jax.random.normal(kb, (embed_dim,), dtype=jnp.float32) * 0.1

    pe = make_positional_encoding(embed_dim, max_len)
    # Construction-time fold of the Linear bias into the PE table (one-time op,
    # not per call): drops the bias input stream from the kernel.
    pe_plus_bias = pe + bias[None, :]

    out = time_series_embedding(x, weight, pe_plus_bias)
    out = jax.block_until_ready(out)

    # Reference check in plain JAX (same math as the PyTorch module).
    ref = x @ weight + bias[None, None, :] + pe[None, :seq_len, :]
    assert out.shape == (batch, seq_len, embed_dim)
    assert jnp.allclose(out, ref, atol=1e-5, rtol=1e-5)

    print("KERNEL_OK")
</pallas_src>

<mosaic_0001>
module attributes {stable_mosaic.version = 11 : i64} {
  func.func @_embed_kernel(%arg0: i32, %arg1: memref<4x16xf32, #tpu.memory_space<vmem>>, %arg2: memref<16x128xf32, #tpu.memory_space<vmem>>, %arg3: memref<4x128xf32, #tpu.memory_space<vmem>>, %arg4: memref<4x128xf32, #tpu.memory_space<vmem>>) attributes {dimension_semantics = [#tpu.dimension_semantics<parallel>], iteration_bounds = array<i64: 1>, scalar_prefetch = 0 : i64, scratch_operands = 0 : i64, tpu.core_type = #tpu.core_type<tc>, window_params = [{transform_indices = @transform_0, window_bounds = array<i64: 4, 16>}, {pipeline_mode = #tpu.pipeline_mode<synchronous>, transform_indices = @transform_1, window_bounds = array<i64: 16, 128>}, {pipeline_mode = #tpu.pipeline_mode<synchronous>, transform_indices = @transform_2, window_bounds = array<i64: 4, 128>}, {transform_indices = @transform_3, window_bounds = array<i64: 4, 128>}]} {
    %c0 = arith.constant 0 : index
    %c0_0 = arith.constant 0 : index
    %0 = vector.load %arg1[%c0, %c0_0] : memref<4x16xf32, #tpu.memory_space<vmem>>, vector<4x16xf32>
    %c0_1 = arith.constant 0 : index
    %c0_2 = arith.constant 0 : index
    %1 = vector.load %arg2[%c0_1, %c0_2] : memref<16x128xf32, #tpu.memory_space<vmem>>, vector<16x128xf32>
    %cst = arith.constant dense<0.000000e+00> : vector<4x128xf32>
    %2 = tpu.matmul %0, %1, %cst {dimension_numbers = #tpu.dot_dimension_numbers<[1], [0], [0], [1], [0, 0, 1, 1], [], []>} : vector<4x16xf32>, vector<16x128xf32>, vector<4x128xf32> -> vector<4x128xf32>
    %c0_3 = arith.constant 0 : index
    %c0_4 = arith.constant 0 : index
    %3 = vector.load %arg3[%c0_3, %c0_4] : memref<4x128xf32, #tpu.memory_space<vmem>>, vector<4x128xf32>
    %4 = arith.addf %2, %3 : vector<4x128xf32>
    %c0_5 = arith.constant 0 : index
    %c0_6 = arith.constant 0 : index
    %5 = vector.load %arg4[%c0_5, %c0_6] : memref<4x128xf32, #tpu.memory_space<vmem>>, vector<4x128xf32>
    tpu.vector_store %arg4[%c0_5, %c0_6], %4 {strides = array<i32>} : memref<4x128xf32, #tpu.memory_space<vmem>>, vector<4x128xf32>,
    return
  }
  func.func @transform_0(%arg0: i32) -> (i32, i32) {
    %c0_i32 = arith.constant 0 : i32
    %c0_i32_0 = arith.constant 0 : i32
    return %arg0, %c0_i32 : i32, i32
  }
  func.func @transform_1(%arg0: i32) -> (i32, i32) {
    %c0_i32 = arith.constant 0 : i32
    %c0_i32_0 = arith.constant 0 : i32
    %c0_i32_1 = arith.constant 0 : i32
    return %c0_i32, %c0_i32_0 : i32, i32
  }
  func.func @transform_2(%arg0: i32) -> (i32, i32) {
    %c0_i32 = arith.constant 0 : i32
    %c0_i32_0 = arith.constant 0 : i32
    %c0_i32_1 = arith.constant 0 : i32
    return %c0_i32, %c0_i32_0 : i32, i32
  }
  func.func @transform_3(%arg0: i32) -> (i32, i32) {
    %c0_i32 = arith.constant 0 : i32
    %c0_i32_0 = arith.constant 0 : i32
    return %arg0, %c0_i32 : i32, i32
  }
}

</mosaic_0001>

<bundles_post_ra>
// kernel: tpu_custom_call.1
= control target key start
LH: loop header
LB: loop body
LE: loop exit
PB: predicated region body
PF: predicated region fallthrough
CT: control target
= control target key end

     0   :  { %8 = vsyncpa [#allocation3], 0  ;;  %s292_s0 = inlined_call_operand.hbm [shape: f32[4,16], index: 0, kind: input, shape index: {}]   ;;  %s293_s1 = inlined_call_operand.hbm [shape: f32[16,128], index: 1, kind: input, shape index: {}]   ;;  %s294_s2 = inlined_call_operand.hbm [shape: f32[4,128], index: 2, kind: input, shape index: {}]   ;;  %s295_s3 = inlined_call_operand.hbm [shape: f32[4,128], index: 3, kind: output, shape index: {}]  }
   0x1   :  { %9 = vsyncpa [#allocation6], 0 }
   0x2   :  { %10 = vsyncpa [#allocation4], 0  ;;  %s252_s12 = smov [#allocation5]  }
   0x3   :  { %s26_s13 = sshll.u32 %s252_s12, 4  ;;  %s27_s13 = int_to_ptr.vmem [resolvable:$true] %s26_s13 }
   0x4   :  { %s174_s14 = scalar_lea.vmem %s27_s13, 256  ;;  %p179_p1 = scmp.lt.s32.totalorder %s27_s13, %s27_s13 }
   0x5   :  { %p175_p0 = scmp.ne.s32.totalorder %s27_s13, %s174_s14  ;;  %p180_p2 = scmp.lt.s32.totalorder %s174_s14, %s174_s14 }
   0x7   :  { %p181_p3 = por %p180_p2, %p179_p1 }
   0x9   :  { %p182_p4 = pnand %p181_p3, %p175_p0 }
   0xb   :  { %185 = shalt.err (!%p182_p4)
}
   0xc   :  { %s253_s15 = smov 128   ;;  %s254_s16 = smov 8  }
   0xd   :  { %32 = dma.hbm_to_vmem [thread:$0]  %s293_s1, 256, %s27_s13, [#allocation6], %s253_s15, %s253_s15, %s254_s16  }
   0xe   :  { %s255_s19 = smov [#allocation2]   ;;  %s256_s21 = smov [#allocation7]  }
   0xf   :  { %s17_s20 = sshll.u32 %s255_s19, 4  ;;  %s39_s22 = sshll.u32 %s256_s21, 4  ;;  %s18_s20 = int_to_ptr.vmem [resolvable:$true] %s17_s20  ;;  %s40_s22 = int_to_ptr.vmem [resolvable:$true] %s39_s22 }
  0x10   :  { %s194_s23 = scalar_lea.vmem %s18_s20, 64  ;;  %p199_p6 = scmp.lt.s32.totalorder %s18_s20, %s18_s20 }
  0x11   :  { %p195_p5 = scmp.ne.s32.totalorder %s18_s20, %s194_s23  ;;  %p200_p7 = scmp.lt.s32.totalorder %s194_s23, %s194_s23 }
  0x13   :  { %p201_p8 = por %p200_p7, %p199_p6 }
  0x15   :  { %p202_p9 = pnand %p201_p8, %p195_p5 }
  0x17   :  { %205 = shalt.err (!%p202_p9)
}
  0x18   :  { %20 = dma.hbm_to_vmem [thread:$0]  %s292_s0, 64, %s18_s20, [#allocation3]  }
  0x19   :  { %s214_s26 = scalar_lea.vmem %s40_s22, 64  ;;  %p219_p11 = scmp.lt.s32.totalorder %s40_s22, %s40_s22 }
  0x1a   :  { %p215_p10 = scmp.ne.s32.totalorder %s40_s22, %s214_s26  ;;  %p220_p12 = scmp.lt.s32.totalorder %s214_s26, %s214_s26 }
  0x1c   :  { %p221_p13 = por %p220_p12, %p219_p11 }
  0x1e   :  { %p222_p0 = pnand %p221_p13, %p215_p10 }
  0x20   :  { %225 = shalt.err (!%p222_p0)
}
  0x21   :  { %42 = dma.hbm_to_vmem [thread:$0]  %s294_s2, 64, %s40_s22, [#allocation6]  }
  0x22   :  { %246 = dma.done.wait [#allocation3], 64  }
  0x23   :  { %247 = vsyncadd [#allocation3], 4294967232 }
  0x24   :  { %248 = dma.done.wait [#allocation6], 320  }
  0x25   :  { %249 = vsyncadd [#allocation6], 4294966976  ;;  %v257_v0 = vmov 0.0   ;;  %vm258_vm0 = vmmov 0   ;;  %v54_v1 = vld [vmem:[#allocation5 + $0x8] sm:$0xff]  ;;  %v53_v2 = vld [vmem:[#allocation5] sm:$0xff] }
  0x26   :  { %151 = vmatprep.subr.mxu0 %v257_v0  ;;  %155 = vmatprep.mubr.msk.f32.mxu0 %vm258_vm0, %v257_v0  ;;  %v52_v3 = vld [vmem:[#allocation2] sm:$0xf]  ;;  %vm56_vm1 = vcmask 130048   ;;  %v55_v4 = vld [vmem:[#allocation7] sm:$0xf]  ;;  %s259_s0 = smov [#allocation8]  }
  0x27   :  { %152 = vmatpush3.msra.mxu0 %v54_v1  ;;  %s137_s28 = sshll.u32 %s259_s0, 4  ;;  %s138_s28 = int_to_ptr.vmem [resolvable:$true] %s137_s28 }
  0x28   :  { %153 = vmatprep.subr.mxu0 %v257_v0  ;;  %s226_s2 = scalar_lea.vmem %s138_s28, 64  ;;  %p231_p2 = scmp.lt.s32.totalorder %s138_s28, %s138_s28 }
  0x29   :  { %154 = vmatpush3.msra.mxu0 %v53_v2  ;;  %p227_p1 = scmp.ne.s32.totalorder %s138_s28, %s226_s2  ;;  %p232_p3 = scmp.lt.s32.totalorder %s226_s2, %s226_s2 }
  0x2a   :  { %156 = vmatmul.mubr.msk.f32.vlgmr.msra.gmra.mxu0 %vm56_vm1, %v52_v3 }
  0x2b   :  { %p233_p4 = por %p232_p3, %p231_p2 }
  0x2d   :  { %p234_p5 = pnand %p233_p4, %p227_p1 }
  0xea   :  { %v126_v5 = vpop.f32.mrf.mxu0 }
  0xeb   :  { %v127_v6 = vadd.f32 %v126_v5, %v55_v4 }
  0xec   :  { %v157_v7 = vpop.f32.mrf.mxu0 }
  0xed   :  { %130 = vst [vmem:[#allocation8] sm:$0xf] %v127_v6 }
  0xee   :  { %237 = shalt.err (!%p234_p5)
}
  0xef   :  { %140 = dma.vmem_to_hbm [thread:$0]  %s138_s28, 64, %s295_s3, [#allocation4]  }
  0xf0   :  { %250 = dma.done.wait [#allocation4], 64  }
  0xf1   :  { %251 = vsyncadd [#allocation4], 4294967232 }
  0xf2   :  { %144 = vsyncpa [#allocation3], 1 }
  0xf3   :  { %145 = vsyncpa [#allocation6], 1 }
  0xf4   :  { %146 = vsyncpa [#allocation4], 1 }

</bundles_post_ra>
